<compile_context>
chip_gen: v7x
topology: tpu7x:2x2x1
jax: 0.10.0
libtpu: 0.0.40
codegen_flags: <defaults>
</compile_context>

<pallas_src>
import math

import jax
import jax.numpy as jnp
from jax.experimental import pallas as pl
from jax.experimental.pallas import tpu as pltpu


_LANE = 128
# ~8 MiB per block: amortizes per-grid-step overhead on v5e/v6e (128 MiB VMEM) and keeps
# the 4-buffer (in+out, double-buffered) working set at ~32 MiB, inside v7x's 64 MiB VMEM.
_TARGET_BLOCK_BYTES = 8 * 1024 * 1024
# Only force >=2 parallel tiles (for v7x megacore) once the copy is big enough to matter.
_MIN_BYTES_FOR_SPLIT = 4 * 1024 * 1024


def _copy_kernel(x_ref, o_ref):
    # One contiguous, lane-dense tile of the flattened tensor.
    o_ref[...] = x_ref[...]


def _sublane_pack(dtype):
    # Rows per packed 32-bit sublane group: f32 -> 8, bf16 -> 16, int8/fp8 -> 32.
    return max(8, 32 // max(1, jnp.dtype(dtype).itemsize))


def _vmem_limit(block_bytes):
    # in + out, double-buffered, plus headroom; capped safely below v7x's 64 MiB physical.
    return int(min(60 * 1024 * 1024,
                   max(4 * block_bytes + 8 * 1024 * 1024, 16 * 1024 * 1024)))


def _flatten_copy_aligned(x, n, f):
    """total % 128 == 0: view the flat buffer as (R, 128) so every block is a contiguous,
    lane-dense chunk with zero sublane padding even when the batch dim is tiny."""
    dtype = x.dtype
    itemsize = jnp.dtype(dtype).itemsize
    pack = _sublane_pack(dtype)
    total = n * f
    r = total // _LANE
    x2 = x.reshape(r, _LANE)                     # metadata-only, row-major

    row_bytes = _LANE * itemsize
    if r <= pack:
        tr = r                                    # tiny input: one full-extent block
    else:
        max_tr = max(pack, (_TARGET_BLOCK_BYTES // row_bytes) // pack * pack)
        tr = (min(r, max_tr) // pack) * pack      # multiple of the sublane pack

    # Give the "parallel" axis >=2 tiles on large copies so megacore can split them.
    if total * itemsize >= _MIN_BYTES_FOR_SPLIT and pl.cdiv(r, tr) < 2:
        tr = max(pack, ((pl.cdiv(r, 2) + pack - 1) // pack) * pack)

    block_bytes = tr * row_bytes
    out = pl.pallas_call(
        _copy_kernel,
        out_shape=jax.ShapeDtypeStruct((r, _LANE), dtype),
        grid=(pl.cdiv(r, tr),),
        in_specs=[pl.BlockSpec((tr, _LANE), lambda i: (i, 0))],
        out_specs=pl.BlockSpec((tr, _LANE), lambda i: (i, 0)),
        input_output_aliases={0: 0},              # donate: no second (N,F) HBM buffer
        compiler_params=pltpu.CompilerParams(
            dimension_semantics=("parallel",),
            vmem_limit_bytes=_vmem_limit(block_bytes),
        ),
    )(x2)
    return out.reshape(n, f)


def _flatten_copy_unaligned(x2, n, f):
    """Fallback for total % 128 != 0: tile (N, F) with 128-multiple feature tiles and a
    masked tail (no single whole-array block), batch tiles a multiple of 8 where possible."""
    dtype = x2.dtype
    itemsize = jnp.dtype(dtype).itemsize
    pack = _sublane_pack(dtype)

    if f < _LANE:
        tf = f                                    # full feature dim (legal), masked stores
    else:
        bn_est = n if n <= pack else pack
        max_tf = max(_LANE, (_TARGET_BLOCK_BYTES // max(1, bn_est * itemsize)) // _LANE * _LANE)
        tf = min(max_tf, (f // _LANE) * _LANE)    # 128-multiple; last grid step is masked

    if n <= pack:
        bn = n                                    # full batch dim (legal)
    else:
        rows_budget = max(pack, (_TARGET_BLOCK_BYTES // max(1, tf * itemsize)) // pack * pack)
        bn = max(pack, min((n // pack) * pack, rows_budget))

    block_bytes = bn * tf * itemsize
    return pl.pallas_call(
        _copy_kernel,
        out_shape=jax.ShapeDtypeStruct((n, f), dtype),
        grid=(pl.cdiv(n, bn), pl.cdiv(f, tf)),
        in_specs=[pl.BlockSpec((bn, tf), lambda i, j: (i, j))],
        out_specs=pl.BlockSpec((bn, tf), lambda i, j: (i, j)),
        input_output_aliases={0: 0},
        compiler_params=pltpu.CompilerParams(
            dimension_semantics=("parallel", "parallel"),
            vmem_limit_bytes=_vmem_limit(block_bytes),
        ),
    )(x2)


def pallas_flatten(x):
    """Pallas implementation of `lambda x: x.view(x.size(0), -1)` (NCHW -> (N, C*H*W))."""
    n = x.shape[0]
    f = math.prod(x.shape[1:])
    total = n * f
    # Zero-cost row-major metadata reshape == torch's contiguous .view(n, -1).
    x2 = x.reshape(n, f)
    if total == 0:
        return x2
    if total % _LANE == 0:
        return _flatten_copy_aligned(x, n, f)
    return _flatten_copy_unaligned(x2, n, f)


class Lambda:
    """JAX/Pallas port of hand_mobilenet.Lambda: a layer that simply calls `func` with x."""

    def __init__(self, func):
        self.func = func

    def __call__(self, x):
        return self.func(x)


if __name__ == "__main__":
    key = jax.random.PRNGKey(0)
    x = jax.random.normal(key, (2, 4, 16, 16), dtype=jnp.float32)

    # Lambda instantiated with the flatten func used in hand_mobilenet's classifier head.
    layer = Lambda(pallas_flatten)
    y = layer(x)
    y = jax.block_until_ready(y)

    # Reference: torch's x.view(x.size(0), -1) on a contiguous NCHW tensor.
    ref = x.reshape(x.shape[0], -1)
    assert y.shape == (2, 4 * 16 * 16), y.shape
    assert y.dtype == x.dtype
    assert jnp.allclose(y, ref), "mismatch vs reference flatten"

    print("KERNEL_OK")
</pallas_src>

<mosaic_0001>
module attributes {stable_mosaic.version = 11 : i64} {
  func.func @_copy_kernel(%arg0: i32, %arg1: memref<16x128xf32, #tpu.memory_space<vmem>>, %arg2: memref<16x128xf32, #tpu.memory_space<vmem>>) attributes {dimension_semantics = [#tpu.dimension_semantics<parallel>], iteration_bounds = array<i64: 1>, scalar_prefetch = 0 : i64, scratch_operands = 0 : i64, tpu.core_type = #tpu.core_type<tc>, window_params = [{transform_indices = @transform_0, window_bounds = array<i64: 16, 128>}, {transform_indices = @transform_1, window_bounds = array<i64: 16, 128>}]} {
    %c0 = arith.constant 0 : index
    %c0_0 = arith.constant 0 : index
    %0 = vector.load %arg1[%c0, %c0_0] : memref<16x128xf32, #tpu.memory_space<vmem>>, vector<16x128xf32>
    %c0_1 = arith.constant 0 : index
    %c0_2 = arith.constant 0 : index
    %1 = vector.load %arg2[%c0_1, %c0_2] : memref<16x128xf32, #tpu.memory_space<vmem>>, vector<16x128xf32>
    tpu.vector_store %arg2[%c0_1, %c0_2], %0 {strides = array<i32>} : memref<16x128xf32, #tpu.memory_space<vmem>>, vector<16x128xf32>,
    return
  }
  func.func @transform_0(%arg0: i32) -> (i32, i32) {
    %c0_i32 = arith.constant 0 : i32
    %c0_i32_0 = arith.constant 0 : i32
    return %arg0, %c0_i32 : i32, i32
  }
  func.func @transform_1(%arg0: i32) -> (i32, i32) {
    %c0_i32 = arith.constant 0 : i32
    %c0_i32_0 = arith.constant 0 : i32
    return %arg0, %c0_i32 : i32, i32
  }
}

</mosaic_0001>

<bundles_post_ra>
// kernel: tpu_custom_call.1
= control target key start
LH: loop header
LB: loop body
LE: loop exit
PB: predicated region body
PF: predicated region fallthrough
CT: control target
= control target key end

     0   :  { %6 = vsyncpa [#allocation3], 0  ;;  %s134_s0 = inlined_call_operand.hbm [shape: f32[16,128], index: 0, kind: input, shape index: {}, may-alias: {0,1}]   ;;  %s135_s1 = inlined_call_operand.hbm [shape: f32[16,128], index: 1, kind: output, shape index: {}, may-alias: {0,1}]  }
   0x1   :  { %7 = vsyncpa [#allocation4], 0  ;;  %s96_s6 = smov [#allocation2]   ;;  %s48_s10 = scalar_lea.hbm %s134_s0, 256 }
   0x2   :  { %s13_s7 = sshll.u32 %s96_s6, 4  ;;  %p49_p0 = scmp.ne.s32.totalorder %s134_s0, %s48_s10  ;;  %s14_s7 = int_to_ptr.vmem [resolvable:$true] %s13_s7 }
   0x3   :  { %p52_p1 = scmp.lt.u32.totalorder %s48_s10, %s134_s0 }
   0x5   :  { %p54_p2 = pnand %p52_p1, %p49_p0 }
   0x7   :  { %57 = shalt.err (!%p54_p2)
}
   0x8   :  { %s58_s15 = scalar_lea.vmem %s14_s7, 256  ;;  %p63_p4 = scmp.lt.s32.totalorder %s14_s7, %s14_s7 }
   0x9   :  { %p59_p3 = scmp.ne.s32.totalorder %s14_s7, %s58_s15  ;;  %p64_p5 = scmp.lt.s32.totalorder %s58_s15, %s58_s15 }
   0xb   :  { %p65_p6 = por %p64_p5, %p63_p4 }
   0xd   :  { %p66_p7 = pnand %p65_p6, %p59_p3 }
   0xf   :  { %69 = shalt.err (!%p66_p7)
}
  0x10   :  { %s97_s16 = smov 128   ;;  %s98_s17 = smov 8  }
  0x11   :  { %19 = dma.hbm_to_vmem [thread:$0]  %s134_s0, 256, %s14_s7, [#allocation3], %s97_s16, %s97_s16, %s98_s17  }
  0x12   :  { %92 = dma.done.wait [#allocation3], 256  }
  0x13   :  { %93 = vsyncadd [#allocation3], 4294967040  ;;  %s99_s20 = smov [#allocation5]   ;;  %v23_v0 = vld [vmem:[#allocation2] sm:$0xff]  ;;  %v24_v1 = vld [vmem:[#allocation2 + $0x8] sm:$0xff] }
  0x14   :  { %s32_s21 = sshll.u32 %s99_s20, 4  ;;  %25 = vst [vmem:[#allocation5] sm:$0xff] %v23_v0  ;;  %26 = vst [vmem:[#allocation5 + $0x8] sm:$0xff] %v24_v1  ;;  %s33_s21 = int_to_ptr.vmem [resolvable:$true] %s32_s21 }
  0x15   :  { %s70_s22 = scalar_lea.vmem %s33_s21, 256  ;;  %p75_p9 = scmp.lt.s32.totalorder %s33_s21, %s33_s21 }
  0x16   :  { %p71_p8 = scmp.ne.s32.totalorder %s33_s21, %s70_s22  ;;  %p76_p10 = scmp.lt.s32.totalorder %s70_s22, %s70_s22 }
  0x18   :  { %p77_p11 = por %p76_p10, %p75_p9 }
  0x1a   :  { %p78_p12 = pnand %p77_p11, %p71_p8 }
  0x1c   :  { %81 = shalt.err (!%p78_p12)
}
  0x1d   :  { %s82_s0 = scalar_lea.hbm %s135_s1, 256 }
  0x1e   :  { %p83_p13 = scmp.ne.s32.totalorder %s135_s1, %s82_s0  ;;  %p86_p0 = scmp.lt.u32.totalorder %s82_s0, %s135_s1 }
  0x20   :  { %p88_p1 = pnand %p86_p0, %p83_p13 }
  0x22   :  { %91 = shalt.err (!%p88_p1)
}
  0x23   :  { %38 = dma.vmem_to_hbm [thread:$0]  %s33_s21, 256, %s135_s1, [#allocation4], %s97_s16, %s97_s16, %s98_s17  }
  0x24   :  { %94 = dma.done.wait [#allocation4], 256  }
  0x25   :  { %95 = vsyncadd [#allocation4], 4294967040 }
  0x26   :  { %42 = vsyncpa [#allocation3], 1 }
  0x27   :  { %43 = vsyncpa [#allocation4], 1 }

</bundles_post_ra>
